<compile_context>
chip_gen: v6e
topology: v6e:2x2x1
jax: 0.10.0
libtpu: 0.0.40
codegen_flags: <defaults>
</compile_context>

<pallas_src>
import math

import jax
import jax.numpy as jnp
from jax.experimental import pallas as pl
from jax.experimental.pallas import tpu as pltpu


def _drop_connect_kernel(x_ref, s_ref, o_ref):
    # x_ref / o_ref: (TB, TF) activation tile; s_ref: (TB, 1) f32 per-sample
    # scale (0.0 or 1/(1-p)).  Row-broadcast multiply in f32, cast the product.
    o_ref[...] = (x_ref[...].astype(jnp.float32) * s_ref[...]).astype(o_ref.dtype)


def _pick_tiles(N, F, itemsize):
    """Choose a sublane/lane-dense (TB, TF) tile under a ~2 MiB per-buffer cap."""
    # dtype-aware sublane granularity: 8 rows f32, 16 bf16, 32 int8/fp8.
    sublane = max(8, 32 // itemsize)
    # <= ~2 MiB per buffer => 2 double-buffers x (in + out) <= ~8 MiB pipelined
    # VMEM: fits v5e (16 MiB scoped default), v6e (32 MiB) and v7x (32/64 MiB).
    budget_elems = (2 << 20) // itemsize

    # Lane-dense feature tile: multiple of 128, preferring a divisor of F so
    # there is no masked trailing block along the feature axis.
    max_tf = min(F, max(128, budget_elems // sublane))
    max_tf = max(128, (max_tf // 128) * 128)
    if F <= max_tf:
        tf = F                                  # full feature dim
    else:
        tf = max_tf
        t = max_tf
        while t >= 128:
            if F % t == 0:
                tf = t
                break
            t -= 128

    rows = max(1, budget_elems // tf)
    if N <= rows:
        tb = N                                  # full batch dim
    else:
        tb = max(sublane, (rows // sublane) * sublane)
    return tb, tf


def drop_connect(x, seed, p=0.5, training=True):
    """x: (N, C, H, W).  Per-sample: x * floor(1 - p + U[0,1)) / (1 - p)."""
    assert p < 1
    if not training:
        return x

    N = x.shape[0]
    F = int(math.prod(x.shape[1:]))

    # Per-sample keep/scale computed once outside the kernel (tiny XLA op) so a
    # sample can never be partially dropped; kept in f32 for exact expectation.
    key = jax.random.PRNGKey(seed)
    u = jax.random.uniform(key, (N, 1), dtype=jnp.float32)
    keep = jnp.floor(jnp.float32(1.0 - p) + u)              # 0.0 or 1.0
    scales = keep * jnp.float32(1.0 / (1.0 - p))            # 0.0 or 1/(1-p)

    xr = x.reshape(N, F)
    tb, tf = _pick_tiles(N, F, jnp.dtype(x.dtype).itemsize)
    gb, gf = pl.cdiv(N, tb), pl.cdiv(F, tf)

    # Put the longer grid axis first so v7x's two TensorCores split it evenly;
    # both axes are independent ("parallel"), neutral on v5e / v6e.
    if gf >= gb:
        grid = (gf, gb)
        x_map = lambda j, i: (i, j)
        s_map = lambda j, i: (i, 0)
    else:
        grid = (gb, gf)
        x_map = lambda i, j: (i, j)
        s_map = lambda i, j: (i, 0)

    out = pl.pallas_call(
        _drop_connect_kernel,
        out_shape=jax.ShapeDtypeStruct((N, F), x.dtype),
        grid=grid,
        in_specs=[
            pl.BlockSpec((tb, tf), x_map),    # activation tile, sublane/lane dense
            pl.BlockSpec((tb, 1), s_map),     # per-sample scale column
        ],
        out_specs=pl.BlockSpec((tb, tf), x_map),
        compiler_params=pltpu.CompilerParams(
            dimension_semantics=("parallel", "parallel")),
    )(xr, scales)
    return out.reshape(x.shape)


if __name__ == "__main__":
    key = jax.random.PRNGKey(0)
    N, C, H, W = 2, 4, 16, 16
    x = jax.random.normal(key, (N, C, H, W), dtype=jnp.float32)

    p = 0.5
    y = drop_connect(x, seed=0, p=p, training=True)
    y = jax.block_until_ready(y)

    # sanity: each sample is either all zeros or x / (1 - p)
    x_np = jax.device_get(x)
    y_np = jax.device_get(y)
    for n in range(N):
        scaled = x_np[n] / (1.0 - p)
        ok_keep = bool(jnp.allclose(y_np[n], scaled, atol=1e-5))
        ok_drop = bool(jnp.allclose(y_np[n], 0.0, atol=1e-6))
        assert ok_keep or ok_drop, f"sample {n}: not a valid drop-connect output"

    # eval mode is identity
    y_eval = drop_connect(x, seed=0, p=p, training=False)
    assert bool(jnp.allclose(y_eval, x))

    print("KERNEL_OK")
</pallas_src>

<mosaic_0001>
module attributes {stable_mosaic.version = 11 : i64} {
  func.func @_drop_connect_kernel(%arg0: i32, %arg1: i32, %arg2: memref<2x1024xf32, #tpu.memory_space<vmem>>, %arg3: memref<2x1xf32, #tpu.memory_space<vmem>>, %arg4: memref<2x1024xf32, #tpu.memory_space<vmem>>) attributes {dimension_semantics = [#tpu.dimension_semantics<parallel>, #tpu.dimension_semantics<parallel>], iteration_bounds = array<i64: 1, 1>, scalar_prefetch = 0 : i64, scratch_operands = 0 : i64, tpu.core_type = #tpu.core_type<tc>, window_params = [{transform_indices = @transform_0, window_bounds = array<i64: 2, 1024>}, {transform_indices = @transform_1, window_bounds = array<i64: 2, 1>}, {transform_indices = @transform_2, window_bounds = array<i64: 2, 1024>}]} {
    %c0 = arith.constant 0 : index
    %c0_0 = arith.constant 0 : index
    %0 = vector.load %arg2[%c0, %c0_0] : memref<2x1024xf32, #tpu.memory_space<vmem>>, vector<2x1024xf32>
    %c0_1 = arith.constant 0 : index
    %c0_2 = arith.constant 0 : index
    %1 = vector.load %arg3[%c0_1, %c0_2] : memref<2x1xf32, #tpu.memory_space<vmem>>, vector<2x1xf32>
    %2 = vector.broadcast %1 : vector<2x1xf32> to vector<2x1024xf32>
    %3 = arith.mulf %0, %2 : vector<2x1024xf32>
    %c0_3 = arith.constant 0 : index
    %c0_4 = arith.constant 0 : index
    %4 = vector.load %arg4[%c0_3, %c0_4] : memref<2x1024xf32, #tpu.memory_space<vmem>>, vector<2x1024xf32>
    tpu.vector_store %arg4[%c0_3, %c0_4], %3 {strides = array<i32>} : memref<2x1024xf32, #tpu.memory_space<vmem>>, vector<2x1024xf32>,
    return
  }
  func.func @transform_0(%arg0: i32, %arg1: i32) -> (i32, i32) {
    %c0_i32 = arith.constant 0 : i32
    return %arg1, %arg0 : i32, i32
  }
  func.func @transform_1(%arg0: i32, %arg1: i32) -> (i32, i32) {
    %c0_i32 = arith.constant 0 : i32
    %c0_i32_0 = arith.constant 0 : i32
    return %arg1, %c0_i32 : i32, i32
  }
  func.func @transform_2(%arg0: i32, %arg1: i32) -> (i32, i32) {
    %c0_i32 = arith.constant 0 : i32
    return %arg1, %arg0 : i32, i32
  }
}

</mosaic_0001>

<bundles_post_ra>
// kernel: tpu_custom_call.1
= control target key start
LH: loop header
LB: loop body
LE: loop exit
PB: predicated region body
PF: predicated region fallthrough
CT: control target
= control target key end

     0   :  { %7 = vsyncpa [#allocation3], 0  ;;  %s135_s0 = inlined_call_operand.hbm [shape: f32[2,1024], index: 0, kind: input, shape index: {}]   ;;  %s136_s1 = inlined_call_operand.vmem [shape: f32[2,1], index: 1, kind: input, shape index: {}]   ;;  %s137_s2 = inlined_call_operand.hbm [shape: f32[2,1024], index: 2, kind: output, shape index: {}]  }
   0x1   :  { %8 = vsyncpa [#allocation4], 0  ;;  %s107_s9 = smov [#allocation2]  }
   0x2   :  { %s15_s10 = sshll.u32 %s107_s9, 4  ;;  %s16_s10 = int_to_ptr.vmem [resolvable:$true] %s15_s10 }
   0x3   :  { %s71_s11 = scalar_lea.vmem %s16_s10, 256  ;;  %p76_p1 = scmp.lt.s32.totalorder %s16_s10, %s16_s10 }
   0x4   :  { %p72_p0 = scmp.ne.s32.totalorder %s16_s10, %s71_s11  ;;  %p77_p2 = scmp.lt.s32.totalorder %s71_s11, %s71_s11 }
   0x6   :  { %p78_p3 = por %p77_p2, %p76_p1 }
   0x8   :  { %p79_p4 = pnand %p78_p3, %p72_p0 }
   0xa   :  { %82 = shalt.err (!%p79_p4)
}
   0xb   :  { %18 = dma.hbm_to_vmem [thread:$0]  %s135_s0, 256, %s16_s10, [#allocation3]  }
   0xc   :  { %103 = dma.done.wait [#allocation3], 256  }
   0xd   :  { %104 = vsyncadd [#allocation3], 4294967040  ;;  %v108_v0 = vmov 0   ;;  %v26_v1 = vld [vmem:[%s136_s1] sm:$0x3]  ;;  %v34_v4 = vlaneseq  ;;  %v25_v10 = vld [vmem:[#allocation2 + $0x8] sm:$0xff] }
   0xe   :  { %62 = vset.pattern.permute.xlu0 %v108_v0  ;;  %v109_v2 = vmov 269488144   ;;  %v24_v9 = vld [vmem:[#allocation2] sm:$0xff]  ;;  %s110_s16 = smov [#allocation5]  }
   0xf   :  { %29 = vperm.xlu0 %62, %v26_v1   ;;  %v32_v3 = vunpack.c.l.s4 %v109_v2  ;;  %v35_v6 = vshrl.u32 %v34_v4, 7  ;;  %s49_s0 = sshll.u32 %s110_s16, 4  ;;  %s50_s0 = int_to_ptr.vmem [resolvable:$true] %s49_s0 }
  0x10   :  { %s83_s17 = scalar_lea.vmem %s50_s0, 256  ;;  %p88_p6 = scmp.lt.s32.totalorder %s50_s0, %s50_s0 }
  0x11   :  { %v33_v5 = vunpack.c.0.s8 %v32_v3  ;;  %p84_p5 = scmp.ne.s32.totalorder %s50_s0, %s83_s17  ;;  %p89_p7 = scmp.lt.s32.totalorder %s83_s17, %s83_s17 }
  0x13   :  { %v36_v7 = vsub.s32 %v33_v5, %v35_v6  ;;  %p90_p8 = por %p89_p7, %p88_p6 }
  0x15   :  { %p91_p9 = pnand %p90_p8, %p84_p5 }
  0x8a   :  { %v30_v8 = vpop.permute.xlu0 %29 }
  0x8b   :  { %v37_v11 = vrot.slane %v30_v8, %v36_v7 }
  0x8d   :  { %v39_v12 = vmul.f32 %v37_v11, %v24_v9  ;;  %v40_v13 = vmul.f32 %v37_v11, %v25_v10 }
  0x8f   :  { %41 = vst [vmem:[#allocation5] sm:$0xff] %v39_v12  ;;  %42 = vst [vmem:[#allocation5 + $0x8] sm:$0xff] %v40_v13 }
  0x90   :  { %94 = shalt.err (!%p91_p9)
}
  0x91   :  { %52 = dma.vmem_to_hbm [thread:$0]  %s50_s0, 256, %s137_s2, [#allocation4]  }
  0x92   :  { %105 = dma.done.wait [#allocation4], 256  }
  0x93   :  { %106 = vsyncadd [#allocation4], 4294967040 }
  0x94   :  { %56 = vsyncpa [#allocation3], 1 }
  0x95   :  { %57 = vsyncpa [#allocation4], 1 }

</bundles_post_ra>
